<compile_context>
chip_gen: v7x
topology: tpu7x:2x2x1
jax: 0.10.0
libtpu: 0.0.40
codegen_flags: <defaults>
</compile_context>

<pallas_src>
import functools

import jax
import jax.numpy as jnp
from jax.experimental import pallas as pl
from jax.experimental.pallas import tpu as pltpu


def encoder_layer_kernel(x_ref,
                         wqkv_ref, bqkv_ref,      # (E, 3E), (1, 3E)
                         wo_ref, bo_ref,          # (E, E),  (1, E)
                         w1_ref, b1_ref,          # (E, F),  (1, F)
                         w2_ref, b2_ref,          # (F, E),  (1, E)
                         o_ref, *, num_heads):
    Bb, S, E = x_ref.shape
    H = num_heads
    Dh = E // H
    scale = 1.0 / (Dh ** 0.5)
    cdt = wqkv_ref.dtype                            # MXU input dtype (bf16)

    # Fold batch into the matmul M dimension: (Bb, S, E) -> (Bb*S, E).
    xm = x_ref[...].reshape(Bb * S, E).astype(cdt)

    # ---- fused QKV projection: single (Bb*S, E) @ (E, 3E) matmul ------------
    qkv = jnp.dot(xm, wqkv_ref[...],
                  preferred_element_type=jnp.float32) + bqkv_ref[...]   # (Bb*S, 3E) f32

    # Lane slices at offsets 0, E, 2E; fold (Bb, H) into one batch axis so all
    # attention matmuls are plain 3-D batched dots.
    def to_heads(t):                               # (Bb*S, E) -> (Bb*H, S, Dh)
        return t.reshape(Bb, S, H, Dh).transpose(0, 2, 1, 3).reshape(Bb * H, S, Dh)

    q = to_heads(qkv[:, 0 * E:1 * E] * scale)      # scale on q, not on (S,S) scores
    k = to_heads(qkv[:, 1 * E:2 * E])
    v = to_heads(qkv[:, 2 * E:3 * E])

    # ---- scaled dot-product attention, all heads / batch at once -------------
    s = jnp.einsum("nqd,nkd->nqk", q.astype(cdt), k.astype(cdt),
                   preferred_element_type=jnp.float32)                  # (Bb*H, S, S)
    s = s - jnp.max(s, axis=-1, keepdims=True)
    p = jnp.exp(s)                                                       # f32 (EUP)
    p = p * pl.reciprocal(jnp.sum(p, axis=-1, keepdims=True), approx=True)

    o = jnp.einsum("nqk,nkd->nqd", p.astype(cdt), v.astype(cdt),
                   preferred_element_type=jnp.float32)                   # (Bb*H, S, Dh)
    om = (o.reshape(Bb, H, S, Dh).transpose(0, 2, 1, 3)
           .reshape(Bb * S, E).astype(cdt))                              # (Bb*S, E)

    # ---- output projection: one K=E matmul -----------------------------------
    attn = jnp.dot(om, wo_ref[...],
                   preferred_element_type=jnp.float32) + bo_ref[...]     # (Bb*S, E) f32

    # ---- FeedForward: Linear -> ReLU -> Linear -------------------------------
    h1 = jnp.dot(attn.astype(cdt), w1_ref[...],
                 preferred_element_type=jnp.float32) + b1_ref[...]       # (Bb*S, F)
    h1 = jnp.maximum(h1, 0.0)
    out = jnp.dot(h1.astype(cdt), w2_ref[...],
                  preferred_element_type=jnp.float32) + b2_ref[...]      # (Bb*S, E)

    o_ref[...] = out.reshape(Bb, S, E).astype(o_ref.dtype)


def encoder_layer(x, params, num_heads, *, batch_block=1,
                  compute_dtype=jnp.bfloat16):
    B, S, E = x.shape
    H = num_heads
    assert E % H == 0, "embed_size must be divisible by num_heads"
    assert B % batch_block == 0, "batch must be divisible by batch_block"
    Bb = batch_block
    F = params["w1"].shape[1]

    # ---- host-side weight packing (free, runs in XLA outside the kernel) -----
    wqkv = jnp.concatenate([params["wq"], params["wk"], params["wv"]],
                           axis=1).astype(compute_dtype)                 # (E, 3E)
    bqkv = jnp.concatenate([params["bq"], params["bk"], params["bv"]],
                           axis=1)                                       # (1, 3E) f32
    wo = params["wo"].astype(compute_dtype)                              # (E, E)
    w1 = params["w1"].astype(compute_dtype)                              # (E, F)
    w2 = params["w2"].astype(compute_dtype)                              # (F, E)
    bo, b1, b2 = params["bo"], params["b1"], params["b2"]                # f32 biases

    # Weights/biases: full-array VMEM residency, single copy, no pipelining.
    vmem = pl.BlockSpec(memory_space=pltpu.MemorySpace.VMEM)
    in_specs = [
        pl.BlockSpec((Bb, S, E), lambda b: (b, 0, 0)),   # x: Bb batches per step
        vmem, vmem,                                      # wqkv, bqkv
        vmem, vmem,                                      # wo, bo
        vmem, vmem,                                      # w1, b1
        vmem, vmem,                                      # w2, b2
    ]
    out_spec = pl.BlockSpec((Bb, S, E), lambda b: (b, 0, 0))

    # Explicit VMEM budget: resident weights + double-buffered x/out blocks
    # + live f32 intermediates, with headroom.
    wbytes = jnp.dtype(compute_dtype).itemsize
    weight_bytes = (3 * E * E + E * E + 2 * E * F) * wbytes + (3 * E + 2 * E + F) * 4
    act_bytes = 2 * 2 * Bb * S * E * x.dtype.itemsize          # 2 bufs * (in + out)
    scratch_bytes = (Bb * S * (3 * E + 2 * E + F) + Bb * H * S * S) * 4
    vmem_limit = int(min(max(weight_bytes + act_bytes + scratch_bytes + (4 << 20),
                             32 << 20), 100 << 20))

    # Advisory cost estimate for XLA scheduling.
    flops = 2 * B * S * E * (4 * E + 2 * F + 2 * S)
    transcendentals = B * H * S * (S + 1)                        # exp + approx recip
    bytes_accessed = (2 * B * S * E * x.dtype.itemsize
                      + weight_bytes)

    kernel = functools.partial(encoder_layer_kernel, num_heads=num_heads)
    return pl.pallas_call(
        kernel,
        out_shape=jax.ShapeDtypeStruct((B, S, E), x.dtype),
        grid=(B // Bb,),
        in_specs=in_specs,
        out_specs=out_spec,
        compiler_params=pltpu.CompilerParams(
            dimension_semantics=("parallel",),
            vmem_limit_bytes=vmem_limit),
        cost_estimate=pl.CostEstimate(flops=flops,
                                      transcendentals=transcendentals,
                                      bytes_accessed=bytes_accessed),
    )(x, wqkv, bqkv, wo, bo, w1, b1, w2, b2)


def encoder_layer_ref(x, params, num_heads, compute_dtype=jnp.bfloat16):
    """Pure-JAX reference (mirrors the kernel's bf16-in / f32-accum matmuls)."""
    B, S, E = x.shape
    H, Dh = num_heads, E // num_heads
    c = lambda a: a.astype(compute_dtype)
    dot = lambda eq, a, b: jnp.einsum(eq, c(a), c(b),
                                      preferred_element_type=jnp.float32)
    q = dot("bse,ef->bsf", x, params["wq"]) + params["bq"]
    k = dot("bse,ef->bsf", x, params["wk"]) + params["bk"]
    v = dot("bse,ef->bsf", x, params["wv"]) + params["bv"]
    q = q.reshape(B, S, H, Dh) * (Dh ** -0.5)       # scale on q, like the kernel
    k = k.reshape(B, S, H, Dh)
    v = v.reshape(B, S, H, Dh)
    s = dot("bqhd,bkhd->bhqk", q, k)
    p = jax.nn.softmax(s, axis=-1)
    a = dot("bhqk,bkhd->bhqd", p, v).transpose(0, 2, 1, 3).reshape(B, S, E)
    a = dot("bse,ef->bsf", a, params["wo"]) + params["bo"]
    h = jnp.maximum(dot("bse,ef->bsf", a, params["w1"]) + params["b1"], 0.0)
    out = dot("bsf,fe->bse", h, params["w2"]) + params["b2"]
    return out.astype(x.dtype)


def init_params(key, embed_size, ff_dim):
    ks = jax.random.split(key, 6)
    scale_e = 1.0 / (embed_size ** 0.5)
    scale_f = 1.0 / (ff_dim ** 0.5)
    return {
        "wq": jax.random.normal(ks[0], (embed_size, embed_size), jnp.float32) * scale_e,
        "wk": jax.random.normal(ks[1], (embed_size, embed_size), jnp.float32) * scale_e,
        "wv": jax.random.normal(ks[2], (embed_size, embed_size), jnp.float32) * scale_e,
        "wo": jax.random.normal(ks[3], (embed_size, embed_size), jnp.float32) * scale_e,
        "w1": jax.random.normal(ks[4], (embed_size, ff_dim), jnp.float32) * scale_e,
        "w2": jax.random.normal(ks[5], (ff_dim, embed_size), jnp.float32) * scale_f,
        "bq": jnp.zeros((1, embed_size), jnp.float32),
        "bk": jnp.zeros((1, embed_size), jnp.float32),
        "bv": jnp.zeros((1, embed_size), jnp.float32),
        "bo": jnp.full((1, embed_size), 0.01, jnp.float32),
        "b1": jnp.full((1, ff_dim), 0.02, jnp.float32),
        "b2": jnp.full((1, embed_size), 0.03, jnp.float32),
    }


if __name__ == "__main__":
    B, S, E = 2, 8, 32
    num_heads, ff_dim = 4, 64

    key = jax.random.PRNGKey(0)
    kx, kp = jax.random.split(key)
    x = jax.random.normal(kx, (B, S, E), jnp.float32)
    params = init_params(kp, E, ff_dim)

    out = encoder_layer(x, params, num_heads, batch_block=1)
    out = jax.block_until_ready(out)

    ref = encoder_layer_ref(x, params, num_heads)
    assert out.shape == (B, S, E)
    assert jnp.allclose(out, ref, atol=2e-2, rtol=2e-2), "mismatch vs JAX reference"

    print("KERNEL_OK")
</pallas_src>

<mosaic_0001>
module attributes {stable_mosaic.version = 11 : i64} {
  func.func @encoder_layer_kernel(%arg0: i32, %arg1: memref<1x8x32xf32, #tpu.memory_space<vmem>>, %arg2: memref<32x96xbf16, #tpu.memory_space<vmem>>, %arg3: memref<1x96xf32, #tpu.memory_space<vmem>>, %arg4: memref<32x32xbf16, #tpu.memory_space<vmem>>, %arg5: memref<1x32xf32, #tpu.memory_space<vmem>>, %arg6: memref<32x64xbf16, #tpu.memory_space<vmem>>, %arg7: memref<1x64xf32, #tpu.memory_space<vmem>>, %arg8: memref<64x32xbf16, #tpu.memory_space<vmem>>, %arg9: memref<1x32xf32, #tpu.memory_space<vmem>>, %arg10: memref<1x8x32xf32, #tpu.memory_space<vmem>>) attributes {dimension_semantics = [#tpu.dimension_semantics<parallel>], iteration_bounds = array<i64: 2>, scalar_prefetch = 0 : i64, scratch_operands = 0 : i64, tpu.core_type = #tpu.core_type<tc>, window_params = [{transform_indices = @transform_0, window_bounds = array<i64: 1, 8, 32>}, {pipeline_mode = #tpu.pipeline_mode<synchronous>, transform_indices = @transform_1, window_bounds = array<i64: 32, 96>}, {pipeline_mode = #tpu.pipeline_mode<synchronous>, transform_indices = @transform_2, window_bounds = array<i64: 1, 96>}, {pipeline_mode = #tpu.pipeline_mode<synchronous>, transform_indices = @transform_3, window_bounds = array<i64: 32, 32>}, {pipeline_mode = #tpu.pipeline_mode<synchronous>, transform_indices = @transform_4, window_bounds = array<i64: 1, 32>}, {pipeline_mode = #tpu.pipeline_mode<synchronous>, transform_indices = @transform_5, window_bounds = array<i64: 32, 64>}, {pipeline_mode = #tpu.pipeline_mode<synchronous>, transform_indices = @transform_6, window_bounds = array<i64: 1, 64>}, {pipeline_mode = #tpu.pipeline_mode<synchronous>, transform_indices = @transform_7, window_bounds = array<i64: 64, 32>}, {pipeline_mode = #tpu.pipeline_mode<synchronous>, transform_indices = @transform_8, window_bounds = array<i64: 1, 32>}, {transform_indices = @transform_9, window_bounds = array<i64: 1, 8, 32>}]} {
    %c0 = arith.constant 0 : index
    %c0_0 = arith.constant 0 : index
    %c0_1 = arith.constant 0 : index
    %0 = vector.load %arg1[%c0, %c0_0, %c0_1] : memref<1x8x32xf32, #tpu.memory_space<vmem>>, vector<1x8x32xf32>
    %1 = vector.shape_cast %0 : vector<1x8x32xf32> to vector<8x32xf32>
    %2 = arith.truncf %1 : vector<8x32xf32> to vector<8x32xbf16>
    %c0_2 = arith.constant 0 : index
    %c0_3 = arith.constant 0 : index
    %3 = vector.load %arg2[%c0_2, %c0_3] : memref<32x96xbf16, #tpu.memory_space<vmem>>, vector<32x96xbf16>
    %cst = arith.constant dense<0.000000e+00> : vector<8x96xf32>
    %4 = tpu.matmul %2, %3, %cst {dimension_numbers = #tpu.dot_dimension_numbers<[1], [0], [0], [1], [0, 0, 1, 1], [], []>} : vector<8x32xbf16>, vector<32x96xbf16>, vector<8x96xf32> -> vector<8x96xf32>
    %c0_4 = arith.constant 0 : index
    %c0_5 = arith.constant 0 : index
    %5 = vector.load %arg3[%c0_4, %c0_5] : memref<1x96xf32, #tpu.memory_space<vmem>>, vector<1x96xf32>
    %6 = vector.broadcast %5 : vector<1x96xf32> to vector<8x96xf32>
    %7 = arith.addf %4, %6 : vector<8x96xf32>
    %8 = vector.extract_strided_slice %7 {offsets = [0, 0], sizes = [8, 32], strides = [1, 1]} : vector<8x96xf32> to vector<8x32xf32>
    %cst_6 = arith.constant 0.353553385 : f32
    %9 = vector.broadcast %cst_6 : f32 to vector<8x32xf32>
    %10 = arith.mulf %8, %9 : vector<8x32xf32>
    %11 = vector.shape_cast %10 : vector<8x32xf32> to vector<1x8x4x8xf32>
    %12 = tpu.transpose %11, [0, 2, 1, 3] : vector<1x8x4x8xf32> -> vector<1x4x8x8xf32>
    %13 = vector.shape_cast %12 : vector<1x4x8x8xf32> to vector<4x8x8xf32>
    %14 = vector.extract_strided_slice %7 {offsets = [0, 32], sizes = [8, 32], strides = [1, 1]} : vector<8x96xf32> to vector<8x32xf32>
    %15 = vector.shape_cast %14 : vector<8x32xf32> to vector<1x8x4x8xf32>
    %16 = tpu.transpose %15, [0, 2, 1, 3] : vector<1x8x4x8xf32> -> vector<1x4x8x8xf32>
    %17 = vector.shape_cast %16 : vector<1x4x8x8xf32> to vector<4x8x8xf32>
    %18 = vector.extract_strided_slice %7 {offsets = [0, 64], sizes = [8, 32], strides = [1, 1]} : vector<8x96xf32> to vector<8x32xf32>
    %19 = vector.shape_cast %18 : vector<8x32xf32> to vector<1x8x4x8xf32>
    %20 = tpu.transpose %19, [0, 2, 1, 3] : vector<1x8x4x8xf32> -> vector<1x4x8x8xf32>
    %21 = vector.shape_cast %20 : vector<1x4x8x8xf32> to vector<4x8x8xf32>
    %22 = arith.truncf %13 : vector<4x8x8xf32> to vector<4x8x8xbf16>
    %23 = arith.truncf %17 : vector<4x8x8xf32> to vector<4x8x8xbf16>
    "tpu.trace_start"() <{level = 10 : i32, message = "nqd,nkd->nqk"}> : () -> ()
    %cst_7 = arith.constant dense<0.000000e+00> : vector<4x8x8xf32>
    %24 = tpu.matmul %22, %23, %cst_7 {dimension_numbers = #tpu.dot_dimension_numbers<[2], [2], [1], [1], [0, 0, 0, 1, 1, 1], [0], [0]>} : vector<4x8x8xbf16>, vector<4x8x8xbf16>, vector<4x8x8xf32> -> vector<4x8x8xf32>
    "tpu.trace_stop"() : () -> ()
    %cst_8 = arith.constant dense<0xFF800000> : vector<4x8xf32>
    %25 = vector.multi_reduction <maximumf>, %24, %cst_8 [2] : vector<4x8x8xf32> to vector<4x8xf32>
    %26 = vector.shape_cast %25 : vector<4x8xf32> to vector<4x8x1xf32>
    %27 = vector.broadcast %26 : vector<4x8x1xf32> to vector<4x8x8xf32>
    %28 = arith.subf %24, %27 : vector<4x8x8xf32>
    %29 = math.exp %28 : vector<4x8x8xf32>
    %cst_9 = arith.constant dense<0.000000e+00> : vector<4x8xf32>
    %30 = vector.multi_reduction <add>, %29, %cst_9 [2] : vector<4x8x8xf32> to vector<4x8xf32>
    %31 = vector.shape_cast %30 : vector<4x8xf32> to vector<4x8x1xf32>
    %32 = tpu.reciprocal %31 {approx = true} : vector<4x8x1xf32> -> vector<4x8x1xf32>
    %33 = vector.broadcast %32 : vector<4x8x1xf32> to vector<4x8x8xf32>
    %34 = arith.mulf %29, %33 : vector<4x8x8xf32>
    %35 = arith.truncf %34 : vector<4x8x8xf32> to vector<4x8x8xbf16>
    %36 = arith.truncf %21 : vector<4x8x8xf32> to vector<4x8x8xbf16>
    "tpu.trace_start"() <{level = 10 : i32, message = "nqk,nkd->nqd"}> : () -> ()
    %cst_10 = arith.constant dense<0.000000e+00> : vector<4x8x8xf32>
    %37 = tpu.matmul %35, %36, %cst_10 {dimension_numbers = #tpu.dot_dimension_numbers<[2], [1], [1], [2], [0, 0, 0, 1, 1, 2], [0], [0]>} : vector<4x8x8xbf16>, vector<4x8x8xbf16>, vector<4x8x8xf32> -> vector<4x8x8xf32>
    "tpu.trace_stop"() : () -> ()
    %38 = vector.shape_cast %37 : vector<4x8x8xf32> to vector<1x4x8x8xf32>
    %39 = tpu.transpose %38, [0, 2, 1, 3] : vector<1x4x8x8xf32> -> vector<1x8x4x8xf32>
    %40 = vector.shape_cast %39 : vector<1x8x4x8xf32> to vector<8x32xf32>
    %41 = arith.truncf %40 : vector<8x32xf32> to vector<8x32xbf16>
    %c0_11 = arith.constant 0 : index
    %c0_12 = arith.constant 0 : index
    %42 = vector.load %arg4[%c0_11, %c0_12] : memref<32x32xbf16, #tpu.memory_space<vmem>>, vector<32x32xbf16>
    %cst_13 = arith.constant dense<0.000000e+00> : vector<8x32xf32>
    %43 = tpu.matmul %41, %42, %cst_13 {dimension_numbers = #tpu.dot_dimension_numbers<[1], [0], [0], [1], [0, 0, 1, 1], [], []>} : vector<8x32xbf16>, vector<32x32xbf16>, vector<8x32xf32> -> vector<8x32xf32>
    %c0_14 = arith.constant 0 : index
    %c0_15 = arith.constant 0 : index
    %44 = vector.load %arg5[%c0_14, %c0_15] : memref<1x32xf32, #tpu.memory_space<vmem>>, vector<1x32xf32>
    %45 = vector.broadcast %44 : vector<1x32xf32> to vector<8x32xf32>
    %46 = arith.addf %43, %45 : vector<8x32xf32>
    %47 = arith.truncf %46 : vector<8x32xf32> to vector<8x32xbf16>
    %c0_16 = arith.constant 0 : index
    %c0_17 = arith.constant 0 : index
    %48 = vector.load %arg6[%c0_16, %c0_17] : memref<32x64xbf16, #tpu.memory_space<vmem>>, vector<32x64xbf16>
    %cst_18 = arith.constant dense<0.000000e+00> : vector<8x64xf32>
    %49 = tpu.matmul %47, %48, %cst_18 {dimension_numbers = #tpu.dot_dimension_numbers<[1], [0], [0], [1], [0, 0, 1, 1], [], []>} : vector<8x32xbf16>, vector<32x64xbf16>, vector<8x64xf32> -> vector<8x64xf32>
    %c0_19 = arith.constant 0 : index
    %c0_20 = arith.constant 0 : index
    %50 = vector.load %arg7[%c0_19, %c0_20] : memref<1x64xf32, #tpu.memory_space<vmem>>, vector<1x64xf32>
    %51 = vector.broadcast %50 : vector<1x64xf32> to vector<8x64xf32>
    %52 = arith.addf %49, %51 : vector<8x64xf32>
    %cst_21 = arith.constant 0.000000e+00 : f32
    %53 = vector.broadcast %cst_21 : f32 to vector<8x64xf32>
    %54 = arith.maximumf %52, %53 : vector<8x64xf32>
    %55 = arith.truncf %54 : vector<8x64xf32> to vector<8x64xbf16>
    %c0_22 = arith.constant 0 : index
    %c0_23 = arith.constant 0 : index
    %56 = vector.load %arg8[%c0_22, %c0_23] : memref<64x32xbf16, #tpu.memory_space<vmem>>, vector<64x32xbf16>
    %cst_24 = arith.constant dense<0.000000e+00> : vector<8x32xf32>
    %57 = tpu.matmul %55, %56, %cst_24 {dimension_numbers = #tpu.dot_dimension_numbers<[1], [0], [0], [1], [0, 0, 1, 1], [], []>} : vector<8x64xbf16>, vector<64x32xbf16>, vector<8x32xf32> -> vector<8x32xf32>
    %c0_25 = arith.constant 0 : index
    %c0_26 = arith.constant 0 : index
    %58 = vector.load %arg9[%c0_25, %c0_26] : memref<1x32xf32, #tpu.memory_space<vmem>>, vector<1x32xf32>
    %59 = vector.broadcast %58 : vector<1x32xf32> to vector<8x32xf32>
    %60 = arith.addf %57, %59 : vector<8x32xf32>
    %61 = vector.shape_cast %60 : vector<8x32xf32> to vector<1x8x32xf32>
    %c0_27 = arith.constant 0 : index
    %c0_28 = arith.constant 0 : index
    %c0_29 = arith.constant 0 : index
    %62 = vector.load %arg10[%c0_27, %c0_28, %c0_29] : memref<1x8x32xf32, #tpu.memory_space<vmem>>, vector<1x8x32xf32>
    tpu.vector_store %arg10[%c0_27, %c0_28, %c0_29], %61 {strides = array<i32>} : memref<1x8x32xf32, #tpu.memory_space<vmem>>, vector<1x8x32xf32>,
    return
  }
  func.func @transform_0(%arg0: i32) -> (i32, i32, i32) {
    %c0_i32 = arith.constant 0 : i32
    %c0_i32_0 = arith.constant 0 : i32
    %c0_i32_1 = arith.constant 0 : i32
    return %arg0, %c0_i32, %c0_i32_0 : i32, i32, i32
  }
  func.func @transform_1(%arg0: i32) -> (i32, i32) {
    %c0_i32 = arith.constant 0 : i32
    %c0_i32_0 = arith.constant 0 : i32
    %c0_i32_1 = arith.constant 0 : i32
    return %c0_i32, %c0_i32_0 : i32, i32
  }
  func.func @transform_2(%arg0: i32) -> (i32, i32) {
    %c0_i32 = arith.constant 0 : i32
    %c0_i32_0 = arith.constant 0 : i32
    %c0_i32_1 = arith.constant 0 : i32
    return %c0_i32, %c0_i32_0 : i32, i32
  }
  func.func @transform_3(%arg0: i32) -> (i32, i32) {
    %c0_i32 = arith.constant 0 : i32
    %c0_i32_0 = arith.constant 0 : i32
    %c0_i32_1 = arith.constant 0 : i32
    return %c0_i32, %c0_i32_0 : i32, i32
  }
  func.func @transform_4(%arg0: i32) -> (i32, i32) {
    %c0_i32 = arith.constant 0 : i32
    %c0_i32_0 = arith.constant 0 : i32
    %c0_i32_1 = arith.constant 0 : i32
    return %c0_i32, %c0_i32_0 : i32, i32
  }
  func.func @transform_5(%arg0: i32) -> (i32, i32) {
    %c0_i32 = arith.constant 0 : i32
    %c0_i32_0 = arith.constant 0 : i32
    %c0_i32_1 = arith.constant 0 : i32
    return %c0_i32, %c0_i32_0 : i32, i32
  }
  func.func @transform_6(%arg0: i32) -> (i32, i32) {
    %c0_i32 = arith.constant 0 : i32
    %c0_i32_0 = arith.constant 0 : i32
    %c0_i32_1 = arith.constant 0 : i32
    return %c0_i32, %c0_i32_0 : i32, i32
  }
  func.func @transform_7(%arg0: i32) -> (i32, i32) {
    %c0_i32 = arith.constant 0 : i32
    %c0_i32_0 = arith.constant 0 : i32
    %c0_i32_1 = arith.constant 0 : i32
    return %c0_i32, %c0_i32_0 : i32, i32
  }
  func.func @transform_8(%arg0: i32) -> (i32, i32) {
    %c0_i32 = arith.constant 0 : i32
    %c0_i32_0 = arith.constant 0 : i32
    %c0_i32_1 = arith.constant 0 : i32
    return %c0_i32, %c0_i32_0 : i32, i32
  }
  func.func @transform_9(%arg0: i32) -> (i32, i32, i32) {
    %c0_i32 = arith.constant 0 : i32
    %c0_i32_0 = arith.constant 0 : i32
    %c0_i32_1 = arith.constant 0 : i32
    return %arg0, %c0_i32, %c0_i32_0 : i32, i32, i32
  }
}

</mosaic_0001>

<bundles_post_ra>
// kernel: tpu_custom_call.1
= control target key start
LH: loop header
LB: loop body
LE: loop exit
PB: predicated region body
PF: predicated region fallthrough
CT: control target
= control target key end

     0   :  { %14 = vsyncpa [#allocation3], 0  ;;  %s2509_s0 = inlined_call_operand.vmem [shape: f32[2,8,32], index: 0, kind: input, shape index: {}]   ;;  %s2510_s1 = inlined_call_operand.vmem [shape: bf16[32,96], index: 1, kind: input, shape index: {}]   ;;  %s2511_s2 = inlined_call_operand.vmem [shape: f32[1,96], index: 2, kind: input, shape index: {}]   ;;  %s2512_s3 = inlined_call_operand.vmem [shape: bf16[32,32], index: 3, kind: input, shape index: {}]   ;;  %s2513_s4 = inlined_call_operand.vmem [shape: f32[1,32], index: 4, kind: input, shape index: {}]   ;;  %s2514_s5 = inlined_call_operand.hbm [shape: bf16[32,64], index: 5, kind: input, shape index: {}]   ;;  %s2515_s6 = inlined_call_operand.vmem [shape: f32[1,64], index: 6, kind: input, shape index: {}]   ;;  %s2516_s7 = inlined_call_operand.vmem [shape: bf16[64,32], index: 7, kind: input, shape index: {}]   ;;  %s2517_s8 = inlined_call_operand.vmem [shape: f32[1,32], index: 8, kind: input, shape index: {}]   ;;  %s2518_s9 = inlined_call_operand.hbm [shape: f32[2,8,32], index: 9, kind: output, shape index: {}]  }
   0x1   :  { %15 = vsyncpa [#allocation4], 0 }
   0x2   :  { %17 = vsyncpa [#allocation4 + $0x1], 0  ;;  %s2163_s30 = smov 0   ;;  %s2165_s10 = smov 0  }
   0x3   :  { %s2167_s11 = smov 0   ;;  %s2169_s12 = smov 0  }
   0x4 LB: > { %s2184_s13 = sadd.s32 4294967295, %s2095_s12   ;;  %s1751_s14 = sadd.s32 4294967294, %s2095_s12   ;;  %s2095_s12 = sphi %s2169_s12, %s2534_s12   ;;  %s2091_s11 = sphi %s2167_s11, %s2533_s11   ;;  %s2087_s10 = sphi %s2165_s10, %s2532_s10   ;;  %s2083_s30 = sphi %s2163_s30, %s2531_s30  }
   0x5   : > { %s2188_s15 = sadd.s32 1, %s2095_s12   ;;  %s224_s16 = sadd.s32 1, %s2091_s11 }
   0x6   : > { %s221_s17 = ssub.s32 %s2095_s12, %s2188_s15  ;;  %p234_p0 = scmp.ne.s32.totalorder %s2091_s11, %s2087_s10 }
   0x7   : > { %p222_p1 = scmp.eq.s32.totalorder %s221_s17, 0  ;;  %p235_p2 = scmp.eq.s32.totalorder %s2184_s13, 1 }
   0x8   : > { %p240_p3 = scmp.ne.s32.totalorder %s2087_s10, %s2083_s30  ;;  %p241_p4 = scmp.eq.s32.totalorder %s1751_s14, 1 }
   0x9   : > { %s2199_s18 = scalar_select %p222_p1, %s2091_s11, %s224_s16  }
   0xa   : > { %p2201_p5 = por %p235_p2, %p234_p0  ;;  %p2205_p6 = por %p241_p4, %p240_p3 }
   0xb   : > { %p1752_p7 = scmp.ge.s32.totalorder %s2095_s12, 1  ;;  %p248_p8 = scmp.lt.s32.totalorder %s2095_s12, 3 }
   0xc   : > { %s2522_s19 = scalar_select %p2201_p5, 1, 0 }
   0xd   : > { %s2523_s20 = scalar_select %p2205_p6, 1, 0 }
   0xe   : > { %p2519_p9 = scmp.eq.s32.totalorder %s2184_s13, 0  ;;  %p2212_p10 = pnand %p1752_p7, %p248_p8 }
   0xf   : > { %s2097_s22 = smov [#allocation2]   ;;  %s2001_s27 = scalar_lea.hbm %s2514_s5, 256 }
  0x10   : > { %s2524_s21 = scalar_select %p2212_p10, 1, 0 }
  0x11   : > { %s272_s23 = sshll.u32 %s2097_s22, 4  ;;  %p1917_p11 = pneg %p2212_p10  ;;  %s273_s23 = int_to_ptr.vmem [resolvable:$true] %s272_s23 }
  0x12   : > { %p2002_p13 = scmp.ne.s32.totalorder %s2514_s5, %s2001_s27  ;;  %p2008_p3 = scmp.lt.u32.totalorder %s2001_s27, %s2514_s5 }
  0x13   : > { %p2220_p12 = pnand %p2519_p9, %p1917_p11 }
  0x15   : > { %p2003_p0 = pneg %p2220_p12 }
  0x17   : > { %p2004_p1 = pnand %p2003_p0, %p2002_p13 }
  0x19   : > { %p2005_p2 = pneg %p2004_p1 }
  0x1b   : > { %p2010_p4 = pnand %p2008_p3, %p2005_p2 }
  0x1d   : > { %2013 = shalt.err (!%p2010_p4)
}
  0x1e   : > { %s2014_s17 = scalar_lea.vmem %s273_s23, 256  ;;  %p2022_p9 = scmp.lt.s32.totalorder %s273_s23, %s273_s23 }
  0x1f   : > { %p2015_p7 = scmp.ne.s32.totalorder %s273_s23, %s2014_s17  ;;  %p2023_p6 = scmp.lt.s32.totalorder %s2014_s17, %s2014_s17 }
  0x21   : > { %p2017_p8 = pnand %p2015_p7, %p2003_p0  ;;  %p2024_p5 = por %p2023_p6, %p2022_p9 }
  0x23   : > { %p2018_p11 = pneg %p2017_p8 }
  0x25   : > { %p2025_p10 = pnand %p2024_p5, %p2018_p11 }
  0x27   : > { %2028 = shalt.err (!%p2025_p10)
}
  0x28   : > { %s2098_s22 = smov 64   ;;  %s2099_s25 = smov 4  }
  0x29   : > { %1920 = dma.hbm_to_vmem [thread:$0]  (!%p2220_p12), %s2514_s5, 256, %s273_s23, [#allocation3], %s2098_s22, %s2098_s22, %s2099_s25  }
  0x2a   : > { %p2526_p13 = scmp.ne.s32.totalorder %s2524_s21, 0 }
  0x2b   : > { %p2527_p1 = scmp.eq.s32.totalorder (!%p2526_p13), %s2184_s13, 0 }
  0x2c   : > { %304 = sbr.rel (%p2526_p13) target bundleno = 2138 (0x85a), region = 56 }
  0x33   : > { %2074 = dma.done.wait (%p2527_p1), [#allocation3], 256   ;;  %p2528_p0 = pmov %p2527_p1 }
  0x34   : > { %p339_p5 = scmp.lt.s32.totalorder %s2184_s13, 1  ;;  %v2100_v0 = vmov 0.0   ;;  %vm2101_vm0 = vmmov 0   ;;  %v1975_v1 = vld [vmem:[%s2510_s1] sm:$0xff]   ;;  %v1976_v2 = vld [vmem:[%s2510_s1 + $0x8] sm:$0xff]   ;;  %vm369_vm1 = vcmask 261120   ;;  %v429_v17 = vlaneseq }
  0x35   : > { %2076 = vsyncadd (%p2528_p0), [#allocation3], 4294967040  ;;  %1827 = vmatprep.subr.bf16.mxu0 %v2100_v0  ;;  %1831 = vmatprep.mubr.msk.bf16.mxu0 %vm2101_vm0, %v2100_v0  ;;  %v1759_v5 = vld [vmem:[%s2511_s2] ss:$0 sm:$0xff]  ;;  %s2102_s28 = smov 104   ;;  %s2105_s24 = smov 112  }
  0x36   : > { %s340_s23 = scalar_select %p339_p5, %s2184_s13, 1  ;;  %1835 = vmatprep.subr.bf16.mxu1 %v2100_v0  ;;  %1837 = vmatprep.mubr.msk.bf16.mxu1 %vm2101_vm0, %v2100_v0  ;;  %v2106_v15 = vmov 1983009808   ;;  %v2107_v18 = vmov 1934713408   ;;  %v430_v21 = vshrl.u32 %v429_v17, 7 }
  0x37   : > { %1828 = vmatpush3.bf16.msra.mxu0 %v1975_v1  ;;  %v427_v16 = vunpack.c.l.s4 %v2106_v15  ;;  %v459_v19 = vunpack.c.l.s4 %v2107_v18  ;;  %vm871_vm2 = vcmask 64512   ;;  %s2108_s27 = smov 64   ;;  %vm1111_vm3 = vcmask 1043456   ;;  %s2109_s22 = smov 16  }
  0x38   : > { %s1758_s21 = sshll.u32 %s340_s23, 3  ;;  %1829 = vmatprep.subr.bf16.mxu0 %v2100_v0  ;;  %s2103_s23 = smov 120   ;;  %vm1442_vm4 = vcmask 130048   ;;  %vm1444_vm5 = vcmask 195584   ;;  %vm1621_vm6 = vcmask 523264  }
  0x39   : > { %s342_s29 = scalar_lea.vmem %s2509_s0, %s1758_s21  ;;  %s2104_s21 = smov 96   ;;  %v428_v20 = vunpack.c.0.s8 %v427_v16  ;;  %v460_v24 = vunpack.c.0.s8 %v459_v19 }
  0x3a   : > { %v344_v3 = vld [vmem:[%s342_s29] sm:$0xff]  ;;  %s2110_s25 = smov 8   ;;  %s2111_s26 = smov 24  }
  0x3b   : > { %v345_v4 = vpack.c.bf16 %v344_v3, %v344_v3  ;;  %1830 = vmatpush3.bf16.msra.mxu0 %v1976_v2  ;;  %v2287_v25 = vsub.s32 %v428_v20, %v430_v21  ;;  %v2289_v32 = vsub.s32 %v460_v24, %v430_v21  ;;  %p2529_p9 = scmp.ne.s32.totalorder %s2522_s19, 0 }
  0x3c   : > { %1841 = vmatprep.subr.bf16.mxu0 %v2100_v0 }
  0x3e   : > { %1832 = vmatmul.mubr.msk.bf16.vlgmr.msra.gmra.mrb[0].mxu0 %vm369_vm1, %v345_v4 }
  0x3f   : > { %1843 = vmatprep.mubr.msk.bf16.mxu0 %vm2101_vm0, %v2100_v0 }
 0x111   : > { %v407_v6 = vpop.f32.mrb[0].mxu0 }
 0x112   : > { %v2271_v7 = vadd.f32 %v1759_v5, %v407_v6  ;;  %v1833_v8 = vpop.f32.mrb[1].mxu0 }
 0x113   : > { %v410_v9 = vpop.f32.mrb[2].mxu0 }
 0x114   : > { %565 = vrot.lane.b32.xlu1 %v2271_v7, %s2102_s28  ;;  %561 = vrot.lane.b32.xlu0 %v2271_v7, %s2103_s23  ;;  %v1834_v10 = vpop.f32.mrb[3].mxu0  ;;  %v413_v14 = vmul.f32 0.35355338, %v2271_v7 }
 0x118   : > { %567 = vrot.lane.b32.xlu1 %v2271_v7, %s2104_s21  ;;  %563 = vrot.lane.b32.xlu0 %v2271_v7, %s2105_s24 }
 0x186   : > { %v2277_v11 = vpop.permute.xlu0 %561  ;;  %v2280_v12 = vpop.permute.xlu1 %565 }
 0x187   : > { %569 = vrot.lane.b32.xlu0 %v2277_v11, %s2104_s21 }
 0x18a   : > { %v2282_v13 = vpop.permute.xlu0 %563  ;;  %v568_v22 = vpop.permute.xlu1 %567 }
 0x18b   : > { %573 = vrot.lane.b32.xlu0 %v2280_v12, %s2104_s21  ;;  %571 = vrot.lane.b32.xlu1 %v2282_v13, %s2104_s21 }
 0x18f   : > { %418 = vrot.lane.b32.xlu0 %v413_v14, %s2105_s24  ;;  %415 = vrot.lane.b32.xlu1 %v413_v14, %s2103_s23 }
 0x193   : > { %421 = vrot.lane.b32.xlu1 %v413_v14, %s2102_s28  ;;  %s336_s28 = sand.u32 1, %s2087_s10  }
 0x194   : > { %s1757_s23 = sshll.u32 %s336_s28, 3 }
 0x195   : > { %s338_s29 = scalar_lea.vmem [#allocation5], %s1757_s23 }
 0x196   : > { %s1680_s14 = sshll.u32 %s338_s29, 4  ;;  %s2468_s14 = int_to_ptr.vmem [resolvable:$true] %s1680_s14 }
 0x1f9   : > { %v570_v23 = vpop.permute.xlu0 %569 }
 0x1fd   : > { %v572_v26 = vpop.permute.xlu1 %571  ;;  %v574_v27 = vpop.permute.xlu0 %573 }
 0x1fe   : > { %v579_v28 = vcombine.low %v568_v22, %v572_v26  ;;  %v580_v29 = vcombine.high %v568_v22, %v572_v26  ;;  %v595_v30 = vcombine.low %v570_v23, %v574_v27  ;;  %v596_v31 = vcombine.high %v570_v23, %v574_v27 }
 0x200   : > { %v587_v33 = vrot.slane %v579_v28, %v2287_v25  ;;  %v594_v34 = vrot.slane %v580_v29, %v2287_v25  ;;  %v603_v35 = vrot.slane %v595_v30, %v2287_v25  ;;  %v610_v36 = vrot.slane %v596_v31, %v2287_v25 }
 0x201   : > { %v416_v37 = vpop.permute.xlu1 %415  ;;  %v419_v42 = vpop.permute.xlu0 %418 }
 0x202   : > { %v611_v38 = vcombine.low %v587_v33, %v603_v35  ;;  %v612_v39 = vcombine.high %v587_v33, %v603_v35  ;;  %v627_v40 = vcombine.low %v594_v34, %v610_v36  ;;  %v628_v41 = vcombine.high %v594_v34, %v610_v36 }
 0x203   : > { %v424_v47 = vcombine.low %v413_v14, %v419_v42  ;;  %v425_v48 = vcombine.high %v413_v14, %v419_v42 }
 0x204   : > { %v619_v43 = vrot.slane %v611_v38, %v2289_v32  ;;  %v626_v44 = vrot.slane %v612_v39, %v2289_v32  ;;  %v635_v45 = vrot.slane %v627_v40, %v2289_v32  ;;  %v642_v46 = vrot.slane %v628_v41, %v2289_v32 }
 0x205   : > { %v422_v49 = vpop.permute.xlu1 %421  ;;  %v432_v60 = vrot.slane %v424_v47, %v2287_v25  ;;  %v439_v61 = vrot.slane %v425_v48, %v2287_v25 }
 0x206   : > { %v647_v50 = vcombine.low %v619_v43, %v626_v44  ;;  %v1765_v51 = vcombine.high %v619_v43, %v626_v44  ;;  %v663_v52 = vcombine.low %v635_v45, %v642_v46  ;;  %v1766_v53 = vcombine.high %v635_v45, %v642_v46 }
 0x207   : > { %v440_v54 = vcombine.low %v416_v37, %v422_v49  ;;  %v441_v55 = vcombine.high %v416_v37, %v422_v49 }
 0x208   : > { %v654_v56 = vrot.slane %v647_v50, %v2287_v25  ;;  %v662_v57 = vrot.slane %v1765_v51, %v2287_v25  ;;  %v670_v58 = vrot.slane %v663_v52, %v2287_v25  ;;  %v678_v59 = vrot.slane %v1766_v53, %v2287_v25 }
 0x209   : > { %v448_v62 = vrot.slane %v440_v54, %v2287_v25  ;;  %v455_v63 = vrot.slane %v441_v55, %v2287_v25 }
 0x20a   : > { %v679_v1 = vcombine.low %v654_v56, %v662_v57  ;;  %v695_v2 = vcombine.low %v670_v58, %v678_v59  ;;  %v680_v10 = vcombine.high %v654_v56, %v662_v57  ;;  %v696_v14 = vcombine.high %v670_v58, %v678_v59 }
 0x20b   : > { %v456_v3 = vcombine.low %v432_v60, %v448_v62  ;;  %v457_v4 = vcombine.high %v432_v60, %v448_v62  ;;  %v472_v5 = vcombine.low %v439_v61, %v455_v63  ;;  %v473_v6 = vcombine.high %v439_v61, %v455_v63 }
 0x20c   : > { %v687_v8 = vrot.slane %v679_v1, %v2289_v32  ;;  %v703_v9 = vrot.slane %v695_v2, %v2289_v32  ;;  %v694_v28 = vrot.slane %v680_v10, %v2289_v32  ;;  %v710_v29 = vrot.slane %v696_v14, %v2289_v32 }
 0x20d   : > { %v464_v15 = vrot.slane %v456_v3, %v2289_v32  ;;  %v471_v16 = vrot.slane %v457_v4, %v2289_v32  ;;  %v480_v17 = vrot.slane %v472_v5, %v2289_v32  ;;  %v487_v18 = vrot.slane %v473_v6, %v2289_v32 }
 0x20e   : > { %v711_v19 = vcombine.low %v687_v8, %v703_v9  ;;  %v712_v20 = vcombine.high %v687_v8, %v703_v9  ;;  %v713_v39 = vcombine.low %v694_v28, %v710_v29  ;;  %v714_v40 = vcombine.high %v694_v28, %v710_v29 }
 0x20f   : > { %v492_v21 = vcombine.low %v464_v15, %v471_v16  ;;  %v1763_v22 = vcombine.high %v464_v15, %v471_v16  ;;  %v508_v23 = vcombine.low %v480_v17, %v487_v18  ;;  %v1764_v24 = vcombine.high %v480_v17, %v487_v18 }
 0x210   : > { %v867_v26 = vpack.c.bf16 %v711_v19, %v711_v19  ;;  %v868_v27 = vpack.c.bf16 %v712_v20, %v712_v20  ;;  %v869_v47 = vpack.c.bf16 %v713_v39, %v713_v39  ;;  %v870_v48 = vpack.c.bf16 %v714_v40, %v714_v40 }
 0x211   : > { %v499_v30 = vrot.slane %v492_v21, %v2287_v25  ;;  %v507_v31 = vrot.slane %v1763_v22, %v2287_v25  ;;  %v515_v33 = vrot.slane %v508_v23, %v2287_v25  ;;  %v523_v34 = vrot.slane %v1764_v24, %v2287_v25 }
 0x212   : > { %v876_v35 = vsel %vm871_vm2, %v867_v26, 0  ;;  %v922_v36 = vsel %vm871_vm2, %v868_v27, 0  ;;  %v968_v53 = vsel %vm871_vm2, %v869_v47, 0  ;;  %v1014_v54 = vsel %vm871_vm2, %v870_v48, 0 }
 0x213   : > { %1836 = vmatpush3.bf16.xpose.msra.mxu1 %v876_v35  ;;  %1842 = vmatpush3.bf16.xpose.msra.mxu0 %v922_v36  ;;  %v524_v37 = vcombine.low %v499_v30, %v507_v31  ;;  %v540_v38 = vcombine.low %v515_v33, %v523_v34  ;;  %v525_v42 = vcombine.high %v499_v30, %v507_v31 }
 0x214   : > { %1847 = vmatprep.subr.bf16.mxu1 %v2100_v0  ;;  %1853 = vmatprep.subr.bf16.mxu0 %v2100_v0  ;;  %v541_v43 = vcombine.high %v515_v33, %v523_v34 }
 0x215   : > { %v532_v41 = vrot.slane %v524_v37, %v2289_v32  ;;  %v548_v44 = vrot.slane %v540_v38, %v2289_v32  ;;  %v539_v51 = vrot.slane %v525_v42, %v2289_v32 }
 0x216   : > { %v555_v52 = vrot.slane %v541_v43, %v2289_v32 }
 0x217   : > { %v556_v45 = vcombine.low %v532_v41, %v548_v44  ;;  %v557_v46 = vcombine.high %v532_v41, %v548_v44 }
 0x218   : > { %v558_v55 = vcombine.low %v539_v51, %v555_v52  ;;  %v559_v56 = vcombine.high %v539_v51, %v555_v52 }
 0x219   : > { %v863_v49 = vpack.c.bf16 %v556_v45, %v556_v45  ;;  %v864_v50 = vpack.c.bf16 %v557_v46, %v557_v46 }
 0x21a   : > { %v865_v57 = vpack.c.bf16 %v558_v55, %v558_v55  ;;  %v866_v58 = vpack.c.bf16 %v559_v56, %v559_v56 }
 0x21b   : > { %1838 = vmatmul.mubr.msk.bf16.vlgmr.msra.gmra.mrb[0].mxu1 %vm871_vm2, %v863_v49  ;;  %1844 = vmatmul.mubr.msk.bf16.vlgmr.msra.gmra.mrb[4].mxu0 %vm871_vm2, %v864_v50 }
 0x21c   : > { %1848 = vmatpush3.bf16.xpose.msra.mxu1 %v968_v53  ;;  %1854 = vmatpush3.bf16.xpose.msra.mxu0 %v1014_v54 }
 0x21d   : > { %1849 = vmatprep.mubr.msk.bf16.mxu1 %vm2101_vm0, %v2100_v0  ;;  %1855 = vmatprep.mubr.msk.bf16.mxu0 %vm2101_vm0, %v2100_v0 }
 0x21e   : > { %1859 = vmatprep.subr.bf16.mxu1 %v2100_v0  ;;  %1865 = vmatprep.subr.bf16.mxu0 %v2100_v0 }
 0x223   : > { %1850 = vmatmul.mubr.msk.bf16.vlgmr.msra.gmra.mrb[4].mxu1 %vm871_vm2, %v865_v57  ;;  %1856 = vmatmul.mubr.msk.bf16.vlgmr.msra.gmra.mrb[8].mxu0 %vm871_vm2, %v866_v58 }
 0x224   : > { %1861 = vmatprep.mubr.msk.bf16.mxu1 %vm2101_vm0, %v2100_v0  ;;  %1867 = vmatprep.mubr.msk.bf16.mxu0 %vm2101_vm0, %v2100_v0 }
 0x2ee   : > { %v912_v59 = vpop.f32.mrb[0].mxu1  ;;  %v958_v60 = vpop.f32.mrb[4].mxu0 }
 0x2ef   : > { %v1839_v61 = vpop.f32.mrb[1].mxu1  ;;  %v1845_v62 = vpop.f32.mrb[5].mxu0  ;;  %v1056_v63 = vsel %vm871_vm2, %v912_v59, -inf  ;;  %v1059_v1 = vsel %vm871_vm2, %v958_v60, -inf }
 0x2f0   : > { %1057 = vmax.xlane.f32.xlu0 %v1056_v63  ;;  %v915_v2 = vpop.f32.mrb[2].mxu1  ;;  %1060 = vmax.xlane.f32.xlu1 %v1059_v1  ;;  %v961_v3 = vpop.f32.mrb[6].mxu0 }
 0x2f1   : > { %v1840_v4 = vpop.f32.mrb[3].mxu1  ;;  %v1846_v5 = vpop.f32.mrb[7].mxu0 }
 0x2f6   : > { %v1004_v6 = vpop.f32.mrb[4].mxu1  ;;  %v1050_v8 = vpop.f32.mrb[8].mxu0 }
 0x2f7   : > { %v1851_v9 = vpop.f32.mrb[5].mxu1  ;;  %v1857_v10 = vpop.f32.mrb[9].mxu0  ;;  %v1062_v14 = vsel %vm871_vm2, %v1004_v6, -inf  ;;  %v1065_v19 = vsel %vm871_vm2, %v1050_v8, -inf }
 0x2f8   : > { %1063 = vmax.xlane.f32.xlu0 %v1062_v14  ;;  %v1007_v15 = vpop.f32.mrb[6].mxu1  ;;  %v1053_v16 = vpop.f32.mrb[10].mxu0 }
 0x2f9   : > { %v1852_v17 = vpop.f32.mrb[7].mxu1  ;;  %v1858_v18 = vpop.f32.mrb[11].mxu0 }
 0x2fc   : > { %1066 = vmax.xlane.f32.xlu0 %v1065_v19 }
 0x301   : > { %715 = vrot.lane.b32.xlu1 %v2271_v7, %s2108_s27 }
 0x37d   : > { %v1058_v20 = vpop.xlane.xlu0 %1057  ;;  %v1061_v21 = vpop.xlane.xlu1 %1060 }
 0x37e   : > { %v1068_v22 = vsub.f32 %v912_v59, %v1058_v20  ;;  %v1069_v23 = vsub.f32 %v958_v60, %v1061_v21 }
 0x380   : > { %v1072_v24 = vmul.f32 1.442695, %v1068_v22  ;;  %v1074_v26 = vmul.f32 1.442695, %v1069_v23 }
 0x382   : > { %1985 = vpow2.f32 %v1072_v24 }
 0x383   : > { %1987 = vpow2.f32 %v1074_v26 }
 0x385   : > { %v1064_v7 = vpop.xlane.xlu0 %1063 }
 0x386   : > { %v1070_v31 = vsub.f32 %v1004_v6, %v1064_v7 }
 0x388   : > { %v1076_v35 = vmul.f32 1.442695, %v1070_v31 }
 0x389   : > { %v1067_v33 = vpop.xlane.xlu0 %1066 }
 0x38a   : > { %v1071_v34 = vsub.f32 %v1050_v8, %v1067_v33  ;;  %1989 = vpow2.f32 %v1076_v35 }
 0x38c   : > { %v2348_v27 = vpop.eup %1985  ;;  %v1078_v36 = vmul.f32 1.442695, %v1071_v34 }
 0x38d   : > { %v2350_v28 = vpop.eup %1987  ;;  %v1080_v29 = vsel %vm871_vm2, %v2348_v27, 0.0 }
 0x38e   : > { %1081 = vadd.xlane.f32.xlu1 %v1080_v29  ;;  %v1083_v30 = vsel %vm871_vm2, %v2350_v28, 0.0  ;;  %1991 = vpow2.f32 %v1078_v36 }
 0x38f   : > { %1084 = vadd.xlane.f32.xlu0 %v1083_v30 }
 0x394   : > { %v2359_v37 = vpop.eup %1989 }
 0x395   : > { %v1086_v39 = vsel %vm871_vm2, %v2359_v37, 0.0 }
 0x398   : > { %v2361_v38 = vpop.eup %1991 }
 0x39f   : > { %719 = vrot.lane.b32.xlu1 %v2282_v13, %s2108_s27 }
 0x3a3   : > { %721 = vrot.lane.b32.xlu1 %v2280_v12, %s2108_s27  ;;  %v1089_v12 = vsel %vm871_vm2, %v2361_v38, 0.0 }
 0x3a5   : > { %717 = vrot.lane.b32.xlu0 %v2277_v11, %s2108_s27  ;;  %v716_v11 = vpop.permute.xlu1 %715  ;;  %s1794_s27 = sshll.u32 %s2184_s13, 7  ;;  %s1667_s13 = scalar_lea.sflag [#allocation4], %s336_s28 }
 0x3c4   : > { %1087 = vadd.xlane.f32.xlu0 %v1086_v39 }
 0x3c7   : > { %1090 = vadd.xlane.f32.xlu1 %v1089_v12 }
 0x41b   : > { %v1082_v13 = vpop.xlane.xlu1 %1081 }
 0x41c   : > { %v1085_v40 = vpop.xlane.xlu0 %1084  ;;  %1993 = vrcp.f32 %v1082_v13 }
 0x41d   : > { %1995 = vrcp.f32 %v1085_v40 }
 0x41f   : > { %v720_v41 = vpop.permute.xlu1 %719 }
 0x420   : > { %v727_v42 = vcombine.low %v716_v11, %v720_v41  ;;  %v728_v43 = vcombine.high %v716_v11, %v720_v41  ;;  %v718_v44 = vpop.permute.xlu0 %717 }
 0x422   : > { %v735_v48 = vrot.slane %v727_v42, %v2287_v25  ;;  %v742_v49 = vrot.slane %v728_v43, %v2287_v25  ;;  %v1977_v43 = vld [vmem:[%s2512_s3] sm:$0xff]  }
 0x423   : > { %v722_v45 = vpop.permute.xlu1 %721 }
 0x424   : > { %v743_v46 = vcombine.low %v718_v44, %v722_v45  ;;  %v744_v47 = vcombine.high %v718_v44, %v722_v45 }
 0x426   : > { %v751_v50 = vrot.slane %v743_v46, %v2287_v25  ;;  %v758_v51 = vrot.slane %v744_v47, %v2287_v25  ;;  %v1994_v15 = vpop.eup %1993 }
 0x427   : > { %v1996_v18 = vpop.eup %1995  ;;  %v1096_v23 = vmul.f32 %v1994_v15, %v2348_v27 }
 0x428   : > { %v759_v52 = vcombine.low %v735_v48, %v751_v50  ;;  %v760_v53 = vcombine.high %v735_v48, %v751_v50  ;;  %v775_v54 = vcombine.low %v742_v49, %v758_v51  ;;  %v776_v55 = vcombine.high %v742_v49, %v758_v51 }
 0x429   : > { %v1097_v24 = vmul.f32 %v1996_v18, %v2350_v28  ;;  %v1100_v34 = vpack.c.bf16 %v1096_v23, %v1096_v23 }
 0x42a   : > { %v767_v56 = vrot.slane %v759_v52, %v2289_v32  ;;  %v774_v57 = vrot.slane %v760_v53, %v2289_v32  ;;  %v783_v58 = vrot.slane %v775_v54, %v2289_v32  ;;  %v790_v59 = vrot.slane %v776_v55, %v2289_v32 }
 0x42b   : > { %v1101_v35 = vpack.c.bf16 %v1097_v24, %v1097_v24 }
 0x42c   : > { %v795_v60 = vcombine.low %v767_v56, %v774_v57  ;;  %v1767_v61 = vcombine.high %v767_v56, %v774_v57  ;;  %v811_v62 = vcombine.low %v783_v58, %v790_v59  ;;  %v1768_v63 = vcombine.high %v783_v58, %v790_v59 }
 0x42e   : > { %v802_v1 = vrot.slane %v795_v60, %v2287_v25  ;;  %v810_v2 = vrot.slane %v1767_v61, %v2287_v25  ;;  %v818_v3 = vrot.slane %v811_v62, %v2287_v25  ;;  %v826_v4 = vrot.slane %v1768_v63, %v2287_v25 }
 0x430   : > { %v827_v5 = vcombine.low %v802_v1, %v810_v2  ;;  %v828_v6 = vcombine.high %v802_v1, %v810_v2  ;;  %v843_v8 = vcombine.low %v818_v3, %v826_v4  ;;  %v844_v9 = vcombine.high %v818_v3, %v826_v4 }
 0x432   : > { %v835_v10 = vrot.slane %v827_v5, %v2289_v32  ;;  %v842_v14 = vrot.slane %v828_v6, %v2289_v32  ;;  %v851_v16 = vrot.slane %v843_v8, %v2289_v32  ;;  %v858_v17 = vrot.slane %v844_v9, %v2289_v32  ;;  %v1978_v8 = vld [vmem:[%s2512_s3 + $0x8] sm:$0xff]  }
 0x434   : > { %v859_v19 = vcombine.low %v835_v10, %v851_v16  ;;  %v860_v20 = vcombine.high %v835_v10, %v851_v16  ;;  %v861_v21 = vcombine.low %v842_v14, %v858_v17  ;;  %v862_v22 = vcombine.high %v842_v14, %v858_v17 }
 0x436   : > { %v1104_v26 = vpack.c.bf16 %v859_v19, %v859_v19  ;;  %v1105_v29 = vpack.c.bf16 %v860_v20, %v860_v20  ;;  %v1106_v31 = vpack.c.bf16 %v861_v21, %v861_v21  ;;  %v1107_v33 = vpack.c.bf16 %v862_v22, %v862_v22 }
 0x438   : > { %v1113_v30 = vsel %vm1111_vm3, %v1104_v26, 0  ;;  %v1159_v7 = vsel %vm1111_vm3, %v1105_v29, 0  ;;  %v1205_v27 = vsel %vm1111_vm3, %v1106_v31, 0  ;;  %v1251_v28 = vsel %vm1111_vm3, %v1107_v33, 0 }
 0x439   : > { %1860 = vmatpush3.bf16.msra.mxu1 %v1113_v30  ;;  %1866 = vmatpush3.bf16.msra.mxu0 %v1159_v7  ;;  %v1979_v7 = vld [vmem:[#allocation2] sm:$0xff]  }
 0x43a   : > { %1871 = vmatprep.subr.bf16.mxu1 %v2100_v0  ;;  %1877 = vmatprep.subr.bf16.mxu0 %v2100_v0 }
 0x43c   : > { %1862 = vmatmul.mubr.msk.bf16.vlgmr.msra.gmra.mrb[8].mxu1 %vm871_vm2, %v1100_v34  ;;  %1868 = vmatmul.mubr.msk.bf16.vlgmr.msra.gmra.mrb[12].mxu0 %vm871_vm2, %v1101_v35 }
 0x43d   : > { %1872 = vmatpush3.bf16.msra.mxu1 %v1205_v27  ;;  %1878 = vmatpush3.bf16.msra.mxu0 %v1251_v28 }
 0x43e   : > { %1873 = vmatprep.mubr.msk.bf16.mxu1 %vm2101_vm0, %v2100_v0  ;;  %1879 = vmatprep.mubr.msk.bf16.mxu0 %vm2101_vm0, %v2100_v0 }
 0x43f   : > { %1883 = vmatprep.subr.bf16.mxu1 %v2100_v0  ;;  %1891 = vmatprep.subr.bf16.mxu0 %v2100_v0 }
 0x451   : > { %v1088_v36 = vpop.xlane.xlu0 %1087 }
 0x452   : > { %1997 = vrcp.f32 %v1088_v36 }
 0x454   : > { %v1091_v39 = vpop.xlane.xlu1 %1090 }
 0x455   : > { %1999 = vrcp.f32 %v1091_v39 }
 0x45c   : > { %v1998_v12 = vpop.eup %1997 }
 0x45d   : > { %v1098_v11 = vmul.f32 %v1998_v12, %v2359_v37 }
 0x45f   : > { %v2000_v13 = vpop.eup %1999  ;;  %v1102_v40 = vpack.c.bf16 %v1098_v11, %v1098_v11 }
 0x460   : > { %v1099_v41 = vmul.f32 %v2000_v13, %v2361_v38 }
 0x461   : > { %1874 = vmatmul.mubr.msk.bf16.vlgmr.msra.gmra.mrb[12].mxu1 %vm871_vm2, %v1102_v40 }
 0x462   : > { %v1103_v42 = vpack.c.bf16 %v1099_v41, %v1099_v41  ;;  %1887 = vmatprep.mubr.msk.bf16.mxu1 %vm2101_vm0, %v2100_v0  ;;  %1884 = vmatpush3.bf16.msra.mxu1 %v1977_v43  ;;  %v1981_v43 = vld [vmem:[%s2516_s7] sm:$0xff]  }
 0x463   : > { %1885 = vmatprep.subr.bf16.mxu1 %v2100_v0 }
 0x464   : > { %1880 = vmatmul.mubr.msk.bf16.vlgmr.msra.gmra.mrb[16].mxu0 %vm871_vm2, %v1103_v42  ;;  %v1980_v42 = vld [vmem:[#allocation2 + $0x8] sm:$0xff]  }
 0x465   : > { %1895 = vmatprep.mubr.msk.bf16.mxu0 %vm2101_vm0, %v2100_v0  ;;  %1892 = vmatpush3.bf16.msra.mxu0 %v1979_v7 }
 0x466   : > { %1886 = vmatpush3.bf16.msra.mxu1 %v1978_v8  ;;  %1893 = vmatprep.subr.bf16.mxu0 %v2100_v0 }
 0x467   : > { %1899 = vmatprep.subr.bf16.mxu1 %v2100_v0 }
 0x469   : > { %1894 = vmatpush3.bf16.msra.mxu0 %v1980_v42 }
 0x50f   : > { %v1149_v37 = vpop.f32.mrb[8].mxu1  ;;  %v1195_v38 = vpop.f32.mrb[12].mxu0 }
 0x510   : > { %v1863_v44 = vpop.f32.mrb[9].mxu1  ;;  %v1869_v45 = vpop.f32.mrb[13].mxu0 }
 0x511   : > { %v1152_v46 = vpop.f32.mrb[10].mxu1  ;;  %v1198_v47 = vpop.f32.mrb[14].mxu0 }
 0x512   : > { %v1864_v48 = vpop.f32.mrb[11].mxu1  ;;  %v1870_v49 = vpop.f32.mrb[15].mxu0 }
 0x534   : > { %v1241_v50 = vpop.f32.mrb[12].mxu1 }
 0x535   : > { %v1293_v51 = vcombine.low %v1149_v37, %v1241_v50  ;;  %v1294_v52 = vcombine.high %v1149_v37, %v1241_v50  ;;  %v1875_v53 = vpop.f32.mrb[13].mxu1  ;;  %v1982_v37 = vld [vmem:[%s2516_s7 + $0x8] sm:$0xff]   ;;  %v1983_v50 = vld [vmem:[%s2516_s7 + $0x10] sm:$0xff]  }
 0x536   : > { %v1244_v54 = vpop.f32.mrb[14].mxu1 }
 0x537   : > { %v1876_v55 = vpop.f32.mrb[15].mxu1  ;;  %v1287_v56 = vpop.f32.mrb[16].mxu0  ;;  %v1301_v61 = vrot.slane %v1293_v51, %v2287_v25  ;;  %v1308_v62 = vrot.slane %v1294_v52, %v2287_v25  ;;  %v1984_v51 = vld [vmem:[%s2516_s7 + $0x18] sm:$0xff]   ;;  %v1783_v52 = vld [vmem:[%s2515_s6] ss:$0 sm:$0xff] }
 0x538   : > { %v1309_v57 = vcombine.low %v1195_v38, %v1287_v56  ;;  %v1310_v58 = vcombine.high %v1195_v38, %v1287_v56  ;;  %v1881_v59 = vpop.f32.mrb[17].mxu0  ;;  %v1779_v38 = vld [vmem:[%s2513_s4] ss:$0 sm:$0xff] }
 0x539   : > { %v1290_v60 = vpop.f32.mrb[18].mxu0 }
 0x53a   : > { %v1317_v63 = vrot.slane %v1309_v57, %v2287_v25  ;;  %v1324_v1 = vrot.slane %v1310_v58, %v2287_v25  ;;  %v1882_v2 = vpop.f32.mrb[19].mxu0 }
 0x53c   : > { %v1325_v3 = vcombine.low %v1301_v61, %v1317_v63  ;;  %v1326_v4 = vcombine.high %v1301_v61, %v1317_v63  ;;  %v1341_v5 = vcombine.low %v1308_v62, %v1324_v1  ;;  %v1342_v6 = vcombine.high %v1308_v62, %v1324_v1 }
 0x53e   : > { %v1333_v9 = vrot.slane %v1325_v3, %v2289_v32  ;;  %v1340_v10 = vrot.slane %v1326_v4, %v2289_v32  ;;  %v1349_v14 = vrot.slane %v1341_v5, %v2289_v32  ;;  %v1356_v15 = vrot.slane %v1342_v6, %v2289_v32 }
 0x540   : > { %v1361_v16 = vcombine.low %v1333_v9, %v1340_v10  ;;  %v1777_v17 = vcombine.high %v1333_v9, %v1340_v10  ;;  %v1377_v18 = vcombine.low %v1349_v14, %v1356_v15  ;;  %v1778_v19 = vcombine.high %v1349_v14, %v1356_v15 }
 0x542   : > { %v1368_v20 = vrot.slane %v1361_v16, %v2287_v25  ;;  %v1376_v21 = vrot.slane %v1777_v17, %v2287_v25  ;;  %v1384_v22 = vrot.slane %v1377_v18, %v2287_v25  ;;  %v1392_v23 = vrot.slane %v1778_v19, %v2287_v25 }
 0x544   : > { %v1394_v24 = vcombine.high %v1368_v20, %v1376_v21  ;;  %v1410_v26 = vcombine.high %v1384_v22, %v1392_v23  ;;  %v1393_v29 = vcombine.low %v1368_v20, %v1376_v21  ;;  %v1409_v30 = vcombine.low %v1384_v22, %v1392_v23 }
 0x546   : > { %v1408_v31 = vrot.slane %v1394_v24, %v2289_v32  ;;  %v1424_v33 = vrot.slane %v1410_v26, %v2289_v32  ;;  %v1401_v34 = vrot.slane %v1393_v29, %v2289_v32  ;;  %v1417_v35 = vrot.slane %v1409_v30, %v2289_v32 }
 0x548   : > { %v1427_v27 = vcombine.low %v1408_v31, %v1424_v33  ;;  %v1426_v28 = vcombine.high %v1401_v34, %v1417_v35  ;;  %v1428_v36 = vcombine.high %v1408_v31, %v1424_v33  ;;  %v1425_v25 = vcombine.low %v1401_v34, %v1417_v35 }
 0x54a   : > { %1434 = vrot.lane.b32.xlu1 %v1427_v27, %s2109_s22  ;;  %1430 = vrot.lane.b32.xlu0 %v1426_v28, %s2110_s25  ;;  %s2466_s22 = scalar_lea.hbm %s2518_s9, %s1794_s27  ;;  %s2029_s25 = scalar_lea.vmem %s2468_s14, 128 }
 0x54b   : > { %p2030_p6 = scmp.ne.s32.totalorder %s2468_s14, %s2029_s25 }
 0x54d   : > { %p2031_p10 = pnand %p2030_p6, %p2529_p9 }
 0x54e   : > { %1438 = vrot.lane.b32.xlu0 %v1428_v36, %s2111_s26  ;;  %s2112_s26 = smov [#allocation5]  }
 0x54f   : > { %p2032_p12 = pneg %p2031_p10  ;;  %s2033_s23 = sshll.u32 %s2112_s26, 4  ;;  %s2034_s23 = int_to_ptr.vmem [resolvable:$false] %s2033_s23 }
 0x550   : > { %s2035_s21 = scalar_lea.vmem %s2034_s23, 256  ;;  %p2036_p2 = scmp.lt.s32.totalorder %s2468_s14, %s2034_s23 }
 0x551   : > { %p2037_p3 = scmp.lt.s32.totalorder %s2035_s21, %s2029_s25 }
 0x553   : > { %p2038_p4 = por %p2037_p3, %p2036_p2 }
 0x555   : > { %p2039_p7 = pnand %p2038_p4, %p2032_p12 }
 0x5bc   : > { %v1431_v39 = vpop.permute.xlu0 %1430  ;;  %v1435_v12 = vpop.permute.xlu1 %1434 }
 0x5bd   : > { %v1441_v11 = vsel %vm871_vm2, %v1425_v25, %v1431_v39 }
 0x5be   : > { %v1443_v13 = vsel %vm1442_vm4, %v1441_v11, %v1435_v12 }
 0x5c0   : > { %v1439_v32 = vpop.permute.xlu0 %1438 }
 0x5c1   : > { %v1445_v40 = vsel %vm1444_vm5, %v1443_v13, %v1439_v32 }
 0x5c2   : > { %v1446_v41 = vpack.c.bf16 %v1445_v40, %v1445_v40 }
 0x5c4   : > { %1888 = vmatmul.mubr.msk.bf16.vlgmr.msra.gmra.mrb[16].mxu1 %vm369_vm1, %v1446_v41 }
 0x5c5   : > { %1907 = vmatprep.mubr.msk.bf16.mxu1 %vm2101_vm0, %v2100_v0  ;;  %1900 = vmatpush3.bf16.msra.mxu1 %v1981_v43 }
 0x5c6   : > { %1901 = vmatprep.subr.bf16.mxu1 %v2100_v0 }
 0x5c9   : > { %1902 = vmatpush3.bf16.msra.mxu1 %v1982_v37 }
 0x5ca   : > { %1903 = vmatprep.subr.bf16.mxu1 %v2100_v0 }
 0x5cd   : > { %1904 = vmatpush3.bf16.msra.mxu1 %v1983_v50 }
 0x5ce   : > { %1905 = vmatprep.subr.bf16.mxu1 %v2100_v0  ;;  %v1787_v0 = vld [vmem:[%s2517_s8] ss:$0 sm:$0xff] }
 0x5d1   : > { %1906 = vmatpush3.bf16.msra.mxu1 %v1984_v51 }
 0x697   : > { %v1507_v44 = vpop.f32.mrb[16].mxu1 }
 0x698   : > { %v1508_v45 = vadd.f32 %v1779_v38, %v1507_v44  ;;  %v1889_v46 = vpop.f32.mrb[17].mxu1 }
 0x699   : > { %v1510_v47 = vpop.f32.mrb[18].mxu1 }
 0x69a   : > { %v1513_v48 = vpack.c.bf16 %v1508_v45, %v1508_v45  ;;  %v1890_v49 = vpop.f32.mrb[19].mxu1 }
 0x69c   : > { %1896 = vmatmul.mubr.msk.bf16.vlgmr.msra.gmra.mrb[20].mxu0 %vm369_vm1, %v1513_v48 }
 0x76f   : > { %v1574_v53 = vpop.f32.mrb[20].mxu0 }
 0x770   : > { %v1575_v54 = vadd.f32 %v1783_v52, %v1574_v53  ;;  %v1897_v55 = vpop.f32.mrb[21].mxu0 }
 0x771   : > { %v1577_v56 = vpop.f32.mrb[22].mxu0 }
 0x772   : > { %v1580_v57 = vmax.f32 %v1575_v54, 0.0  ;;  %v1898_v58 = vpop.f32.mrb[23].mxu0 }
 0x774   : > { %v1581_v59 = vpack.c.bf16 %v1580_v57, %v1580_v57 }
 0x776   : > { %1908 = vmatmul.mubr.msk.bf16.vlgmr.msra.gmra.mrb[20].mxu1 %vm1621_vm6, %v1581_v59 }
 0x849   : > { %v1659_v60 = vpop.f32.mrb[20].mxu1 }
 0x84a   : > { %v1660_v61 = vadd.f32 %v1787_v0, %v1659_v60  ;;  %v1909_v62 = vpop.f32.mrb[21].mxu1 }
 0x84b   : > { %v1662_v63 = vpop.f32.mrb[22].mxu1 }
 0x84c   : > { %v1910_v1 = vpop.f32.mrb[23].mxu1  ;;  %1665 = vst.msk [vmem:[%s338_s29] sm:$0xff] %vm369_vm1, %v1660_v61 }
 0x84d   : > { %2042 = shalt.err (!%p2039_p7)
}
 0x84e   : > { %s2043_s28 = scalar_lea.hbm %s2466_s22, 128  ;;  %s2047_s29 = scalar_lea.hbm %s2518_s9, 256 }
 0x84f   : > { %p2044_p8 = scmp.ne.s32.totalorder %s2466_s22, %s2043_s28  ;;  %p2048_p1 = scmp.lt.u32.totalorder %s2466_s22, %s2518_s9 }
 0x850   : > { %p2049_p0 = scmp.lt.u32.totalorder %s2047_s29, %s2043_s28  ;;  %p2051_p6 = scmp.lt.u32.totalorder %s2043_s28, %s2466_s22 }
 0x851   : > { %p2045_p11 = pnand %p2044_p8, %p2529_p9 }
 0x852   : > { %p2050_p5 = por %p2049_p0, %p2048_p1 }
 0x853   : > { %p2046_p13 = pneg %p2045_p11 }
 0x854   : > { %p2052_p10 = por %p2051_p6, %p2050_p5 }
 0x856   : > { %p2053_p12 = pnand %p2052_p10, %p2046_p13 }
 0x858   : > { %2056 = shalt.err (!%p2053_p12)
}
 0x859   : > { %1915 = dma.vmem_to_hbm [thread:$0]  (%p2529_p9), %s2468_s14, 128, %s2466_s22, %s1667_s13  }
 0x85a PF: > { %p1927_p2 = scmp.ge.s32.totalorder %s2095_s12, 2  ;;  %s1692_s25 = sand.u32 1, %s2083_s30  }
 0x85b   : > { %p2530_p3 = scmp.ne.s32.totalorder %s2523_s20, 0  ;;  %s1693_s26 = scalar_lea.sflag [#allocation4], %s1692_s25 }
 0x85d   : > { %p1922_p4 = pnand %p1927_p2, %p2530_p3 }
 0x85f   : > { %2078 = dma.done.wait (!%p1922_p4), %s1693_s26, 128  }
 0x860   : > { %2080 = vsyncadd (!%p1922_p4), %s1693_s26, 4294967168  ;;  %p20_p7 = scmp.ge.s32.totalorder %s2188_s15, 4   ;;  %s2531_s30 = smov %s2087_s10 }
 0x861   : > { %s2532_s10 = smov %s2091_s11  ;;  %s2533_s11 = smov %s2199_s18 }
 0x862   : > { %s2534_s12 = smov %s2188_s15  ;;  %22 = sbr.rel (!%p20_p7) target bundleno = 4 (0x4), region = 96 }
 0x869   :  { %1698 = vsyncpa [#allocation3], 1 }
 0x86a   :  { %1700 = vsyncpa [#allocation3 + $0x1], 1 }
 0x86b   :  { %1701 = vsyncpa [#allocation4], 1 }
 0x86c   :  { %1703 = vsyncpa [#allocation4 + $0x1], 1 }

</bundles_post_ra>
